<compile_context>
chip_gen: v6e
topology: v6e:2x2x1
jax: 0.10.0
libtpu: 0.0.40
codegen_flags: <defaults>
</compile_context>

<pallas_src>
import jax
import jax.numpy as jnp
from jax.experimental import pallas as pl
from jax.experimental.pallas import tpu as pltpu


_LANE = 128
_NEG_INF_BIAS = -1e30


def _round_up(n, m):
    return ((n + m - 1) // m) * m


def _mlp_kernel(x_ref, w1_ref, b1_ref, w2_ref, b2_ref, w3_ref, b3_ref,
                w4_ref, b4_ref, o_ref):
    # Matmuls run on the MXU in bf16 with f32 accumulation; elementwise math in f32.
    x = x_ref[...].astype(jnp.bfloat16)
    # Layer 1: Linear(input_dim, 512) + ReLU
    h = jnp.dot(x, w1_ref[...], preferred_element_type=jnp.float32)
    h = jnp.maximum(h + b1_ref[...], 0.0).astype(jnp.bfloat16)
    # Layer 2: Linear(512, 256) + ReLU
    h = jnp.dot(h, w2_ref[...], preferred_element_type=jnp.float32)
    h = jnp.maximum(h + b2_ref[...], 0.0).astype(jnp.bfloat16)
    # Layer 3: Linear(256, 128) + ReLU
    h = jnp.dot(h, w3_ref[...], preferred_element_type=jnp.float32)
    h = jnp.maximum(h + b3_ref[...], 0.0).astype(jnp.bfloat16)
    # Layer 4: Linear(128, out_pad) + softmax(dim=-1)
    logits = jnp.dot(h, w4_ref[...], preferred_element_type=jnp.float32)
    logits = logits + b4_ref[...]
    # Stable softmax over the lane-padded last dim; padded columns carry a
    # -1e30 bias so exp(.) underflows to exactly 0 and the sum is unaffected.
    m = jnp.max(logits, axis=-1, keepdims=True)
    e = jnp.exp(logits - m)
    s = jnp.sum(e, axis=-1, keepdims=True)
    inv = pl.reciprocal(s, approx=True)      # EUP slot (same unit as exp)
    inv = inv * (2.0 - s * inv)              # one Newton step -> ~f32 accuracy
    o_ref[...] = (e * inv).astype(o_ref.dtype)


def _pick_block_b(b):
    # 256-row tiles fill the 256x256 MXU on v6e/v7x (and are a clean multiple of
    # the 128-wide v5e MXU) while amortizing the ~0.35us/step grid overhead.
    # Small batches fall back to a single sublane-aligned tile.
    if b >= 256:
        return 256
    return _round_up(b, 8)


def simple_protein_model(x, params, *, block_b=None):
    """Fused MLP forward: relu(fc1) -> relu(fc2) -> relu(fc3) -> softmax(fc4)."""
    w1, b1, w2, b2, w3, b3, w4, b4 = params
    B, in_dim = x.shape
    out_dim = w4.shape[1]

    if block_b is None:
        block_b = _pick_block_b(B)
    b_pad = _round_up(B, block_b)
    out_pad = _round_up(out_dim, _LANE)

    # Lane-dense output: zero-pad w4 columns; padded bias lanes get -1e30 so the
    # softmax normalization is unchanged.
    if out_pad != out_dim:
        w4 = jnp.pad(w4, ((0, 0), (0, out_pad - out_dim)))
        b4 = jnp.pad(b4, ((0, 0), (0, out_pad - out_dim)),
                     constant_values=_NEG_INF_BIAS)
    if b_pad != B:
        x = jnp.pad(x, ((0, b_pad - B), (0, 0)))

    # Weights to bf16 for the MXU (accumulation stays f32 inside the kernel).
    w1, w2, w3, w4 = (w.astype(jnp.bfloat16) for w in (w1, w2, w3, w4))

    # Grid-invariant blocks (constant index_map) -> single-buffer: no re-DMA
    # between steps, and no wasted second VMEM buffer.
    def resident(arr):
        return pl.BlockSpec(arr.shape, lambda i: (0, 0),
                            pipeline_mode=pl.Buffered(1))

    grid = (b_pad // block_b,)
    out = pl.pallas_call(
        _mlp_kernel,
        out_shape=jax.ShapeDtypeStruct((b_pad, out_pad), jnp.float32),
        grid_spec=pltpu.PrefetchScalarGridSpec(
            num_scalar_prefetch=0,
            grid=grid,
            in_specs=[
                pl.BlockSpec((block_b, in_dim), lambda i: (i, 0)),  # x (streamed)
                resident(w1), resident(b1),
                resident(w2), resident(b2),
                resident(w3), resident(b3),
                resident(w4), resident(b4),
            ],
            out_specs=pl.BlockSpec((block_b, out_pad), lambda i: (i, 0)),
        ),
        compiler_params=pltpu.CompilerParams(
            dimension_semantics=("parallel",)),
    )(x, w1, b1, w2, b2, w3, b3, w4, b4)
    return out[:B, :out_dim]


def init_params(key, input_dim, output_dim):
    """Deterministic init mimicking PyTorch nn.Linear defaults (U(-1/sqrt(fan_in), ...))."""
    dims = [(input_dim, 512), (512, 256), (256, 128), (128, output_dim)]
    params = []
    for (fan_in, fan_out) in dims:
        key, kw, kb = jax.random.split(key, 3)
        bound = 1.0 / jnp.sqrt(fan_in)
        w = jax.random.uniform(kw, (fan_in, fan_out), jnp.float32, -bound, bound)
        b = jax.random.uniform(kb, (1, fan_out), jnp.float32, -bound, bound)
        params += [w, b]
    return tuple(params)


def reference_forward(x, params):
    """Pure-JAX reference mirroring the kernel numerics (bf16 matmuls, f32 accum)."""
    w1, b1, w2, b2, w3, b3, w4, b4 = params

    def layer(h, w, b):
        return jnp.dot(h.astype(jnp.bfloat16), w.astype(jnp.bfloat16),
                       preferred_element_type=jnp.float32) + b

    h = jax.nn.relu(layer(x, w1, b1))
    h = jax.nn.relu(layer(h, w2, b2))
    h = jax.nn.relu(layer(h, w3, b3))
    return jax.nn.softmax(layer(h, w4, b4), axis=-1)


if __name__ == "__main__":
    key = jax.random.PRNGKey(0)
    input_dim, output_dim, batch = 32, 16, 8

    key, kx = jax.random.split(key)
    x = jax.random.normal(kx, (batch, input_dim), jnp.float32)
    params = init_params(key, input_dim, output_dim)

    out = simple_protein_model(x, params)
    out = jax.block_until_ready(out)

    ref = reference_forward(x, params)
    assert out.shape == (batch, output_dim)
    assert jnp.allclose(out, ref, atol=2e-3, rtol=2e-3), "mismatch vs reference"
    assert jnp.allclose(jnp.sum(out, axis=-1), 1.0, atol=1e-4), "softmax rows must sum to 1"

    # Second check: exercise the large-tile path (block_b=256), batch padding
    # and the multi-step 'parallel' grid (both v7x TensorCores get work).
    key, kx2 = jax.random.split(key)
    x2 = jax.random.normal(kx2, (272, input_dim), jnp.float32)
    out2 = jax.block_until_ready(simple_protein_model(x2, params))
    ref2 = reference_forward(x2, params)
    assert out2.shape == (272, output_dim)
    assert jnp.allclose(out2, ref2, atol=2e-3, rtol=2e-3), "mismatch vs reference (large batch)"
    assert jnp.allclose(jnp.sum(out2, axis=-1), 1.0, atol=1e-4), "softmax rows must sum to 1 (large batch)"

    print("KERNEL_OK")
</pallas_src>

<mosaic_0001>
module attributes {stable_mosaic.version = 11 : i64} {
  func.func @_mlp_kernel(%arg0: i32, %arg1: memref<8x32xf32, #tpu.memory_space<vmem>>, %arg2: memref<32x512xbf16, #tpu.memory_space<vmem>>, %arg3: memref<1x512xf32, #tpu.memory_space<vmem>>, %arg4: memref<512x256xbf16, #tpu.memory_space<vmem>>, %arg5: memref<1x256xf32, #tpu.memory_space<vmem>>, %arg6: memref<256x128xbf16, #tpu.memory_space<vmem>>, %arg7: memref<1x128xf32, #tpu.memory_space<vmem>>, %arg8: memref<128x128xbf16, #tpu.memory_space<vmem>>, %arg9: memref<1x128xf32, #tpu.memory_space<vmem>>, %arg10: memref<8x128xf32, #tpu.memory_space<vmem>>) attributes {dimension_semantics = [#tpu.dimension_semantics<parallel>], iteration_bounds = array<i64: 1>, scalar_prefetch = 0 : i64, scratch_operands = 0 : i64, tpu.core_type = #tpu.core_type<tc>, window_params = [{transform_indices = @transform_0, window_bounds = array<i64: 8, 32>}, {pipeline_mode = #tpu.pipeline_mode<synchronous>, transform_indices = @transform_1, window_bounds = array<i64: 32, 512>}, {pipeline_mode = #tpu.pipeline_mode<synchronous>, transform_indices = @transform_2, window_bounds = array<i64: 1, 512>}, {pipeline_mode = #tpu.pipeline_mode<synchronous>, transform_indices = @transform_3, window_bounds = array<i64: 512, 256>}, {pipeline_mode = #tpu.pipeline_mode<synchronous>, transform_indices = @transform_4, window_bounds = array<i64: 1, 256>}, {pipeline_mode = #tpu.pipeline_mode<synchronous>, transform_indices = @transform_5, window_bounds = array<i64: 256, 128>}, {pipeline_mode = #tpu.pipeline_mode<synchronous>, transform_indices = @transform_6, window_bounds = array<i64: 1, 128>}, {pipeline_mode = #tpu.pipeline_mode<synchronous>, transform_indices = @transform_7, window_bounds = array<i64: 128, 128>}, {pipeline_mode = #tpu.pipeline_mode<synchronous>, transform_indices = @transform_8, window_bounds = array<i64: 1, 128>}, {transform_indices = @transform_9, window_bounds = array<i64: 8, 128>}]} {
    %c0 = arith.constant 0 : index
    %c0_0 = arith.constant 0 : index
    %0 = vector.load %arg1[%c0, %c0_0] : memref<8x32xf32, #tpu.memory_space<vmem>>, vector<8x32xf32>
    %1 = arith.truncf %0 : vector<8x32xf32> to vector<8x32xbf16>
    %c0_1 = arith.constant 0 : index
    %c0_2 = arith.constant 0 : index
    %2 = vector.load %arg2[%c0_1, %c0_2] : memref<32x512xbf16, #tpu.memory_space<vmem>>, vector<32x512xbf16>
    %cst = arith.constant dense<0.000000e+00> : vector<8x512xf32>
    %3 = tpu.matmul %1, %2, %cst {dimension_numbers = #tpu.dot_dimension_numbers<[1], [0], [0], [1], [0, 0, 1, 1], [], []>} : vector<8x32xbf16>, vector<32x512xbf16>, vector<8x512xf32> -> vector<8x512xf32>
    %c0_3 = arith.constant 0 : index
    %c0_4 = arith.constant 0 : index
    %4 = vector.load %arg3[%c0_3, %c0_4] : memref<1x512xf32, #tpu.memory_space<vmem>>, vector<1x512xf32>
    %5 = vector.broadcast %4 : vector<1x512xf32> to vector<8x512xf32>
    %6 = arith.addf %3, %5 : vector<8x512xf32>
    %cst_5 = arith.constant 0.000000e+00 : f32
    %7 = vector.broadcast %cst_5 : f32 to vector<8x512xf32>
    %8 = arith.maximumf %6, %7 : vector<8x512xf32>
    %9 = arith.truncf %8 : vector<8x512xf32> to vector<8x512xbf16>
    %c0_6 = arith.constant 0 : index
    %c0_7 = arith.constant 0 : index
    %10 = vector.load %arg4[%c0_6, %c0_7] : memref<512x256xbf16, #tpu.memory_space<vmem>>, vector<512x256xbf16>
    %cst_8 = arith.constant dense<0.000000e+00> : vector<8x256xf32>
    %11 = tpu.matmul %9, %10, %cst_8 {dimension_numbers = #tpu.dot_dimension_numbers<[1], [0], [0], [1], [0, 0, 1, 1], [], []>} : vector<8x512xbf16>, vector<512x256xbf16>, vector<8x256xf32> -> vector<8x256xf32>
    %c0_9 = arith.constant 0 : index
    %c0_10 = arith.constant 0 : index
    %12 = vector.load %arg5[%c0_9, %c0_10] : memref<1x256xf32, #tpu.memory_space<vmem>>, vector<1x256xf32>
    %13 = vector.broadcast %12 : vector<1x256xf32> to vector<8x256xf32>
    %14 = arith.addf %11, %13 : vector<8x256xf32>
    %cst_11 = arith.constant 0.000000e+00 : f32
    %15 = vector.broadcast %cst_11 : f32 to vector<8x256xf32>
    %16 = arith.maximumf %14, %15 : vector<8x256xf32>
    %17 = arith.truncf %16 : vector<8x256xf32> to vector<8x256xbf16>
    %c0_12 = arith.constant 0 : index
    %c0_13 = arith.constant 0 : index
    %18 = vector.load %arg6[%c0_12, %c0_13] : memref<256x128xbf16, #tpu.memory_space<vmem>>, vector<256x128xbf16>
    %cst_14 = arith.constant dense<0.000000e+00> : vector<8x128xf32>
    %19 = tpu.matmul %17, %18, %cst_14 {dimension_numbers = #tpu.dot_dimension_numbers<[1], [0], [0], [1], [0, 0, 1, 1], [], []>} : vector<8x256xbf16>, vector<256x128xbf16>, vector<8x128xf32> -> vector<8x128xf32>
    %c0_15 = arith.constant 0 : index
    %c0_16 = arith.constant 0 : index
    %20 = vector.load %arg7[%c0_15, %c0_16] : memref<1x128xf32, #tpu.memory_space<vmem>>, vector<1x128xf32>
    %21 = vector.broadcast %20 : vector<1x128xf32> to vector<8x128xf32>
    %22 = arith.addf %19, %21 : vector<8x128xf32>
    %cst_17 = arith.constant 0.000000e+00 : f32
    %23 = vector.broadcast %cst_17 : f32 to vector<8x128xf32>
    %24 = arith.maximumf %22, %23 : vector<8x128xf32>
    %25 = arith.truncf %24 : vector<8x128xf32> to vector<8x128xbf16>
    %c0_18 = arith.constant 0 : index
    %c0_19 = arith.constant 0 : index
    %26 = vector.load %arg8[%c0_18, %c0_19] : memref<128x128xbf16, #tpu.memory_space<vmem>>, vector<128x128xbf16>
    %cst_20 = arith.constant dense<0.000000e+00> : vector<8x128xf32>
    %27 = tpu.matmul %25, %26, %cst_20 {dimension_numbers = #tpu.dot_dimension_numbers<[1], [0], [0], [1], [0, 0, 1, 1], [], []>} : vector<8x128xbf16>, vector<128x128xbf16>, vector<8x128xf32> -> vector<8x128xf32>
    %c0_21 = arith.constant 0 : index
    %c0_22 = arith.constant 0 : index
    %28 = vector.load %arg9[%c0_21, %c0_22] : memref<1x128xf32, #tpu.memory_space<vmem>>, vector<1x128xf32>
    %29 = vector.broadcast %28 : vector<1x128xf32> to vector<8x128xf32>
    %30 = arith.addf %27, %29 : vector<8x128xf32>
    %cst_23 = arith.constant dense<0xFF800000> : vector<8xf32>
    %31 = vector.multi_reduction <maximumf>, %30, %cst_23 [1] : vector<8x128xf32> to vector<8xf32>
    %32 = vector.shape_cast %31 : vector<8xf32> to vector<8x1xf32>
    %33 = vector.broadcast %32 : vector<8x1xf32> to vector<8x128xf32>
    %34 = arith.subf %30, %33 : vector<8x128xf32>
    %35 = math.exp %34 : vector<8x128xf32>
    %cst_24 = arith.constant dense<0.000000e+00> : vector<8xf32>
    %36 = vector.multi_reduction <add>, %35, %cst_24 [1] : vector<8x128xf32> to vector<8xf32>
    %37 = vector.shape_cast %36 : vector<8xf32> to vector<8x1xf32>
    %38 = tpu.reciprocal %37 {approx = true} : vector<8x1xf32> -> vector<8x1xf32>
    %39 = arith.mulf %37, %38 : vector<8x1xf32>
    %cst_25 = arith.constant 2.000000e+00 : f32
    %40 = vector.broadcast %cst_25 : f32 to vector<8x1xf32>
    %41 = arith.subf %40, %39 : vector<8x1xf32>
    %42 = arith.mulf %38, %41 : vector<8x1xf32>
    %43 = vector.broadcast %42 : vector<8x1xf32> to vector<8x128xf32>
    %44 = arith.mulf %35, %43 : vector<8x128xf32>
    %c0_26 = arith.constant 0 : index
    %c0_27 = arith.constant 0 : index
    %45 = vector.load %arg10[%c0_26, %c0_27] : memref<8x128xf32, #tpu.memory_space<vmem>>, vector<8x128xf32>
    tpu.vector_store %arg10[%c0_26, %c0_27], %44 {strides = array<i32>} : memref<8x128xf32, #tpu.memory_space<vmem>>, vector<8x128xf32>,
    return
  }
  func.func @transform_0(%arg0: i32) -> (i32, i32) {
    %c0_i32 = arith.constant 0 : i32
    %c0_i32_0 = arith.constant 0 : i32
    return %arg0, %c0_i32 : i32, i32
  }
  func.func @transform_1(%arg0: i32) -> (i32, i32) {
    %c0_i32 = arith.constant 0 : i32
    %c0_i32_0 = arith.constant 0 : i32
    %c0_i32_1 = arith.constant 0 : i32
    return %c0_i32, %c0_i32_0 : i32, i32
  }
  func.func @transform_2(%arg0: i32) -> (i32, i32) {
    %c0_i32 = arith.constant 0 : i32
    %c0_i32_0 = arith.constant 0 : i32
    %c0_i32_1 = arith.constant 0 : i32
    return %c0_i32, %c0_i32_0 : i32, i32
  }
  func.func @transform_3(%arg0: i32) -> (i32, i32) {
    %c0_i32 = arith.constant 0 : i32
    %c0_i32_0 = arith.constant 0 : i32
    %c0_i32_1 = arith.constant 0 : i32
    return %c0_i32, %c0_i32_0 : i32, i32
  }
  func.func @transform_4(%arg0: i32) -> (i32, i32) {
    %c0_i32 = arith.constant 0 : i32
    %c0_i32_0 = arith.constant 0 : i32
    %c0_i32_1 = arith.constant 0 : i32
    return %c0_i32, %c0_i32_0 : i32, i32
  }
  func.func @transform_5(%arg0: i32) -> (i32, i32) {
    %c0_i32 = arith.constant 0 : i32
    %c0_i32_0 = arith.constant 0 : i32
    %c0_i32_1 = arith.constant 0 : i32
    return %c0_i32, %c0_i32_0 : i32, i32
  }
  func.func @transform_6(%arg0: i32) -> (i32, i32) {
    %c0_i32 = arith.constant 0 : i32
    %c0_i32_0 = arith.constant 0 : i32
    %c0_i32_1 = arith.constant 0 : i32
    return %c0_i32, %c0_i32_0 : i32, i32
  }
  func.func @transform_7(%arg0: i32) -> (i32, i32) {
    %c0_i32 = arith.constant 0 : i32
    %c0_i32_0 = arith.constant 0 : i32
    %c0_i32_1 = arith.constant 0 : i32
    return %c0_i32, %c0_i32_0 : i32, i32
  }
  func.func @transform_8(%arg0: i32) -> (i32, i32) {
    %c0_i32 = arith.constant 0 : i32
    %c0_i32_0 = arith.constant 0 : i32
    %c0_i32_1 = arith.constant 0 : i32
    return %c0_i32, %c0_i32_0 : i32, i32
  }
  func.func @transform_9(%arg0: i32) -> (i32, i32) {
    %c0_i32 = arith.constant 0 : i32
    %c0_i32_0 = arith.constant 0 : i32
    return %arg0, %c0_i32 : i32, i32
  }
}

</mosaic_0001>

<bundles_post_ra>
// kernel: tpu_custom_call.1
= control target key start
LH: loop header
LB: loop body
LE: loop exit
PB: predicated region body
PF: predicated region fallthrough
CT: control target
= control target key end

     0   :  { %14 = vsyncpa [#allocation3], 0  ;;  %s1642_s0 = inlined_call_operand.hbm [shape: f32[8,32], index: 0, kind: input, shape index: {}]   ;;  %s1643_s1 = inlined_call_operand.hbm [shape: bf16[32,512], index: 1, kind: input, shape index: {}]   ;;  %s1644_s2 = inlined_call_operand.hbm [shape: f32[1,512], index: 2, kind: input, shape index: {}]   ;;  %s1645_s3 = inlined_call_operand.hbm [shape: bf16[512,256], index: 3, kind: input, shape index: {}]   ;;  %s1646_s4 = inlined_call_operand.vmem [shape: f32[1,256], index: 4, kind: input, shape index: {}]   ;;  %s1647_s5 = inlined_call_operand.hbm [shape: bf16[256,128], index: 5, kind: input, shape index: {}]   ;;  %s1648_s6 = inlined_call_operand.vmem [shape: f32[1,128], index: 6, kind: input, shape index: {}]   ;;  %s1649_s7 = inlined_call_operand.hbm [shape: bf16[128,128], index: 7, kind: input, shape index: {}]   ;;  %s1650_s8 = inlined_call_operand.vmem [shape: f32[1,128], index: 8, kind: input, shape index: {}]   ;;  %s1651_s9 = inlined_call_operand.hbm [shape: f32[8,128], index: 9, kind: output, shape index: {}]  }
   0x1   :  { %15 = vsyncpa [#allocation6], 0 }
   0x2   :  { %16 = vsyncpa [#allocation9], 0 }
   0x3   :  { %17 = vsyncpa [#allocation12], 0 }
   0x4   :  { %18 = vsyncpa [#allocation4], 0  ;;  %s1532_s30 = smov [#allocation5]  }
   0x5   :  { %s34_s10 = sshll.u32 %s1532_s30, 4  ;;  %s35_s10 = int_to_ptr.vmem [resolvable:$true] %s34_s10 }
   0x6   :  { %s1390_s11 = scalar_lea.vmem %s35_s10, 1024  ;;  %p1395_p1 = scmp.lt.s32.totalorder %s35_s10, %s35_s10 }
   0x7   :  { %p1391_p0 = scmp.ne.s32.totalorder %s35_s10, %s1390_s11  ;;  %p1396_p2 = scmp.lt.s32.totalorder %s1390_s11, %s1390_s11 }
   0x9   :  { %p1397_p3 = por %p1396_p2, %p1395_p1 }
   0xb   :  { %p1398_p4 = pnand %p1397_p3, %p1391_p0 }
   0xd   :  { %1401 = shalt.err (!%p1398_p4)
}
   0xe   :  { %s1533_s12 = smov 256   ;;  %s1534_s13 = smov 16  }
   0xf   :  { %40 = dma.hbm_to_vmem [thread:$0]  %s1643_s1, 1024, %s35_s10, [#allocation6], %s1533_s12, %s1533_s12, %s1534_s13  }
  0x10   :  { %s1535_s16 = smov [#allocation8]  }
  0x11   :  { %s56_s17 = sshll.u32 %s1535_s16, 4  ;;  %s57_s17 = int_to_ptr.vmem [resolvable:$true] %s56_s17 }
  0x12   :  { %s1410_s18 = scalar_lea.vmem %s57_s17, 8192  ;;  %p1415_p6 = scmp.lt.s32.totalorder %s57_s17, %s57_s17 }
  0x13   :  { %p1411_p5 = scmp.ne.s32.totalorder %s57_s17, %s1410_s18  ;;  %p1416_p7 = scmp.lt.s32.totalorder %s1410_s18, %s1410_s18 }
  0x15   :  { %p1417_p8 = por %p1416_p7, %p1415_p6 }
  0x17   :  { %p1418_p9 = pnand %p1417_p8, %p1411_p5 }
  0x19   :  { %1421 = shalt.err (!%p1418_p9)
}
  0x1a   :  { %s1536_s19 = smov 128   ;;  %s1537_s20 = smov 8  }
  0x1b   :  { %62 = dma.hbm_to_vmem [thread:$0]  %s1645_s3, 8192, %s57_s17, [#allocation9], %s1536_s19, %s1536_s19, %s1537_s20  }
  0x1c   :  { %s1538_s23 = smov [#allocation2]   ;;  %s1539_s25 = smov [#allocation7]  }
  0x1d   :  { %s25_s24 = sshll.u32 %s1538_s23, 4  ;;  %s47_s1 = sshll.u32 %s1539_s25, 4  ;;  %s26_s24 = int_to_ptr.vmem [resolvable:$true] %s25_s24  ;;  %s48_s1 = int_to_ptr.vmem [resolvable:$true] %s47_s1 }
  0x1e   :  { %s1430_s26 = scalar_lea.vmem %s26_s24, 128  ;;  %p1435_p11 = scmp.lt.s32.totalorder %s26_s24, %s26_s24 }
  0x1f   :  { %p1431_p10 = scmp.ne.s32.totalorder %s26_s24, %s1430_s26  ;;  %p1436_p12 = scmp.lt.s32.totalorder %s1430_s26, %s1430_s26 }
  0x21   :  { %p1437_p13 = por %p1436_p12, %p1435_p11 }
  0x23   :  { %p1438_p0 = pnand %p1437_p13, %p1431_p10 }
  0x25   :  { %1441 = shalt.err (!%p1438_p0)
}
  0x26   :  { %28 = dma.hbm_to_vmem [thread:$0]  %s1642_s0, 128, %s26_s24, [#allocation3]  }
  0x27   :  { %s1450_s29 = scalar_lea.vmem %s48_s1, 64  ;;  %p1455_p2 = scmp.lt.s32.totalorder %s48_s1, %s48_s1 }
  0x28   :  { %p1451_p1 = scmp.ne.s32.totalorder %s48_s1, %s1450_s29  ;;  %p1456_p3 = scmp.lt.s32.totalorder %s1450_s29, %s1450_s29 }
  0x2a   :  { %p1457_p4 = por %p1456_p3, %p1455_p2 }
  0x2c   :  { %p1458_p5 = pnand %p1457_p4, %p1451_p1 }
  0x2e   :  { %1461 = shalt.err (!%p1458_p5)
}
  0x2f   :  { %50 = dma.hbm_to_vmem [thread:$0]  %s1644_s2, 64, %s48_s1, [#allocation6]  }
  0x30   :  { %s1540_s10 = smov [#allocation10]  }
  0x31   :  { %s70_s11 = sshll.u32 %s1540_s10, 4  ;;  %s71_s11 = int_to_ptr.vmem [resolvable:$true] %s70_s11 }
  0x32   :  { %s1470_s12 = scalar_lea.vmem %s71_s11, 2048  ;;  %p1475_p7 = scmp.lt.s32.totalorder %s71_s11, %s71_s11 }
  0x33   :  { %p1471_p6 = scmp.ne.s32.totalorder %s71_s11, %s1470_s12  ;;  %p1476_p8 = scmp.lt.s32.totalorder %s1470_s12, %s1470_s12 }
  0x35   :  { %p1477_p9 = por %p1476_p8, %p1475_p7 }
  0x37   :  { %p1478_p10 = pnand %p1477_p9, %p1471_p6 }
  0x39   :  { %1481 = shalt.err (!%p1478_p10)
}
  0x3a   :  { %s1541_s0 = smov 64   ;;  %s1542_s13 = smov 4  }
  0x3b   :  { %76 = dma.hbm_to_vmem [thread:$0]  %s1647_s5, 2048, %s71_s11, [#allocation9], %s1541_s0, %s1541_s0, %s1542_s13  }
  0x3c   :  { %s1543_s16 = smov [#allocation11]  }
  0x3d   :  { %s84_s17 = sshll.u32 %s1543_s16, 4  ;;  %s85_s17 = int_to_ptr.vmem [resolvable:$true] %s84_s17 }
  0x3e   :  { %s1490_s2 = scalar_lea.vmem %s85_s17, 1024  ;;  %p1495_p12 = scmp.lt.s32.totalorder %s85_s17, %s85_s17 }
  0x3f   :  { %p1491_p11 = scmp.ne.s32.totalorder %s85_s17, %s1490_s2  ;;  %p1496_p13 = scmp.lt.s32.totalorder %s1490_s2, %s1490_s2 }
  0x41   :  { %p1497_p0 = por %p1496_p13, %p1495_p12 }
  0x43   :  { %p1498_p1 = pnand %p1497_p0, %p1491_p11 }
  0x45   :  { %1501 = shalt.err (!%p1498_p1)
}
  0x46   :  { %90 = dma.hbm_to_vmem [thread:$0]  %s1649_s7, 1024, %s85_s17, [#allocation12], %s1541_s0, %s1541_s0, %s1542_s13  }
  0x47   :  { %1522 = dma.done.wait [#allocation3], 128  }
  0x48   :  { %1523 = vsyncadd [#allocation3], 4294967168 }
  0x49   :  { %1524 = dma.done.wait [#allocation6], 1088  }
  0x4a   :  { %1525 = vsyncadd [#allocation6], 4294966208 }
  0x4b   :  { %1526 = dma.done.wait [#allocation9], 10240  }
  0x4c   :  { %1527 = vsyncadd [#allocation9], 4294957056 }
  0x4d   :  { %1528 = dma.done.wait [#allocation12], 1024  }
  0x4e   :  { %1529 = vsyncadd [#allocation12], 4294966272  ;;  %v1544_v0 = vmov 0   ;;  %v1246_v1 = vld [vmem:[#allocation5 + $0x24] ss:$16 sps:$4 sm:$0xff]   ;;  %v112_v9 = vld [vmem:[#allocation2] sm:$0xff] }
  0x4f   :  { %220 = vmatprep.mubr.bf16.mxu0 %v1544_v0  ;;  %261 = vmatprep.mubr.bf16.mxu1 %v1544_v0  ;;  %v1248_v2 = vld [vmem:[#allocation5 + $0x2c] ss:$16 sps:$4 sm:$0xff]   ;;  %v1250_v3 = vld [vmem:[#allocation5 + $0x20] ss:$16 sps:$4 sm:$0xff]   ;;  %v1251_v4 = vld [vmem:[#allocation5 + $0x28] ss:$16 sps:$4 sm:$0xff]   ;;  %v113_v12 = vpack.c.bf16 %v112_v9, %v112_v9 }
  0x50   :  { %200 = vmatprep.subr.bf16.mxu0 %v1246_v1  ;;  %241 = vmatprep.subr.bf16.mxu1 %v1248_v2  ;;  %v1252_v5 = vld [vmem:[#allocation5 + $0x4] ss:$16 sps:$4 sm:$0xff]   ;;  %v1254_v6 = vld [vmem:[#allocation5 + $0xc] ss:$16 sps:$4 sm:$0xff]   ;;  %v1256_v7 = vld [vmem:[#allocation5] ss:$16 sps:$4 sm:$0xff]  }
  0x51   :  { %201 = vmatpush1.bf16.msra.mxu0 %v1250_v3  ;;  %242 = vmatpush1.bf16.msra.mxu1 %v1251_v4  ;;  %v1257_v8 = vld [vmem:[#allocation5 + $0x8] ss:$16 sps:$4 sm:$0xff]   ;;  %v1258_v10 = vld [vmem:[#allocation8 + $0x70] ss:$8 sps:$4 sm:$0xff]   ;;  %vm184_vm0 = vcmask 261120   ;;  %vm1546_vm1 = vmmov 0  }
  0x52   :  { %202 = vmatprep.subr.bf16.mxu0 %v1252_v5  ;;  %243 = vmatprep.subr.bf16.mxu1 %v1254_v6  ;;  %v1260_v11 = vld [vmem:[#allocation8 + $0x74] ss:$8 sps:$4 sm:$0xff]   ;;  %v1261_v13 = vld [vmem:[#allocation8 + $0x170] ss:$8 sps:$4 sm:$0xff]   ;;  %v1266_v15 = vld [vmem:[#allocation8 + $0x64] ss:$8 sps:$4 sm:$0xff]  }
  0x53   :  { %v1263_v14 = vld [vmem:[#allocation8 + $0x174] ss:$8 sps:$4 sm:$0xff]   ;;  %v1269_v16 = vld [vmem:[#allocation8 + $0x164] ss:$8 sps:$4 sm:$0xff]   ;;  %v1264_v17 = vld [vmem:[#allocation8 + $0x60] ss:$8 sps:$4 sm:$0xff]  }
  0x54   :  { %v1267_v18 = vld [vmem:[#allocation8 + $0x160] ss:$8 sps:$4 sm:$0xff]   ;;  %v1272_v19 = vld [vmem:[#allocation8 + $0x54] ss:$8 sps:$4 sm:$0xff]   ;;  %v1270_v21 = vld [vmem:[#allocation8 + $0x50] ss:$8 sps:$4 sm:$0xff]  }
  0x55   :  { %203 = vmatpush1.bf16.msra.mxu0 %v1256_v7  ;;  %244 = vmatpush1.bf16.msra.mxu1 %v1257_v8  ;;  %v1275_v20 = vld [vmem:[#allocation8 + $0x154] ss:$8 sps:$4 sm:$0xff]   ;;  %v1273_v22 = vld [vmem:[#allocation8 + $0x150] ss:$8 sps:$4 sm:$0xff]   ;;  %v1278_v23 = vld [vmem:[#allocation8 + $0x44] ss:$8 sps:$4 sm:$0xff]  }
  0x56   :  { %674 = vmatprep.subr.bf16.mxu0 %v1260_v11  ;;  %715 = vmatprep.subr.bf16.mxu1 %v1263_v14  ;;  %v1281_v24 = vld [vmem:[#allocation8 + $0x144] ss:$8 sps:$4 sm:$0xff]   ;;  %v1276_v25 = vld [vmem:[#allocation8 + $0x40] ss:$8 sps:$4 sm:$0xff]   ;;  %v1284_v27 = vld [vmem:[#allocation8 + $0x34] ss:$8 sps:$4 sm:$0xff]  }
  0x57   :  { %v1279_v26 = vld [vmem:[#allocation8 + $0x140] ss:$8 sps:$4 sm:$0xff]   ;;  %v1287_v28 = vld [vmem:[#allocation8 + $0x134] ss:$8 sps:$4 sm:$0xff]   ;;  %v1282_v29 = vld [vmem:[#allocation8 + $0x30] ss:$8 sps:$4 sm:$0xff]  }
  0x58   :  { %1087 = vmatmul.mubr.msk.bf16.vlgmr.msra.gmra.mxu0 %vm184_vm0, %v113_v12  ;;  %1088 = vmatmul.mubr.msk.bf16.vlgmr.msra.gmra.mxu1 %vm184_vm0, %v113_v12  ;;  %v1285_v30 = vld [vmem:[#allocation8 + $0x130] ss:$8 sps:$4 sm:$0xff]   ;;  %v1290_v31 = vld [vmem:[#allocation8 + $0x24] ss:$8 sps:$4 sm:$0xff]   ;;  %v1288_v33 = vld [vmem:[#allocation8 + $0x20] ss:$8 sps:$4 sm:$0xff]   ;;  %v124_v12 = vlaneseq }
  0x59   :  { %675 = vmatpush1.bf16.msra.mxu0 %v1258_v10  ;;  %716 = vmatpush1.bf16.msra.mxu1 %v1261_v13  ;;  %v1293_v32 = vld [vmem:[#allocation8 + $0x124] ss:$8 sps:$4 sm:$0xff]   ;;  %v1291_v34 = vld [vmem:[#allocation8 + $0x120] ss:$8 sps:$4 sm:$0xff]   ;;  %v1296_v35 = vld [vmem:[#allocation8 + $0x14] ss:$8 sps:$4 sm:$0xff]  }
  0x5a   :  { %676 = vmatprep.subr.bf16.mxu0 %v1266_v15  ;;  %717 = vmatprep.subr.bf16.mxu1 %v1269_v16  ;;  %v1299_v36 = vld [vmem:[#allocation8 + $0x114] ss:$8 sps:$4 sm:$0xff]   ;;  %v1294_v37 = vld [vmem:[#allocation8 + $0x10] ss:$8 sps:$4 sm:$0xff]   ;;  %v1302_v39 = vld [vmem:[#allocation8 + $0x4] ss:$8 sps:$4 sm:$0xff]  }
  0x5b   :  { %v1297_v38 = vld [vmem:[#allocation8 + $0x110] ss:$8 sps:$4 sm:$0xff]   ;;  %v1305_v40 = vld [vmem:[#allocation8 + $0x104] ss:$8 sps:$4 sm:$0xff]   ;;  %v1300_v41 = vld [vmem:[#allocation8] ss:$8 sps:$4 sm:$0xff]  }
  0x5c   :  { %v1303_v42 = vld [vmem:[#allocation8 + $0x100] ss:$8 sps:$4 sm:$0xff]   ;;  %v1308_v43 = vld [vmem:[#allocation8 + $0xf4] ss:$8 sps:$4 sm:$0xff]   ;;  %v1306_v45 = vld [vmem:[#allocation8 + $0xf0] ss:$8 sps:$4 sm:$0xff]  }
  0x5d   :  { %677 = vmatpush1.bf16.msra.mxu0 %v1264_v17  ;;  %718 = vmatpush1.bf16.msra.mxu1 %v1267_v18  ;;  %v1311_v44 = vld [vmem:[#allocation8 + $0x1f4] ss:$8 sps:$4 sm:$0xff]   ;;  %v1309_v46 = vld [vmem:[#allocation8 + $0x1f0] ss:$8 sps:$4 sm:$0xff]   ;;  %v1314_v47 = vld [vmem:[#allocation8 + $0xe4] ss:$8 sps:$4 sm:$0xff]  }
  0x5e   :  { %678 = vmatprep.subr.bf16.mxu0 %v1272_v19  ;;  %719 = vmatprep.subr.bf16.mxu1 %v1275_v20  ;;  %v1317_v48 = vld [vmem:[#allocation8 + $0x1e4] ss:$8 sps:$4 sm:$0xff]   ;;  %v1312_v49 = vld [vmem:[#allocation8 + $0xe0] ss:$8 sps:$4 sm:$0xff]   ;;  %v1320_v51 = vld [vmem:[#allocation8 + $0xd4] ss:$8 sps:$4 sm:$0xff]  }
  0x5f   :  { %v1315_v50 = vld [vmem:[#allocation8 + $0x1e0] ss:$8 sps:$4 sm:$0xff]   ;;  %v1323_v52 = vld [vmem:[#allocation8 + $0x1d4] ss:$8 sps:$4 sm:$0xff]   ;;  %v1318_v53 = vld [vmem:[#allocation8 + $0xd0] ss:$8 sps:$4 sm:$0xff]  }
  0x60   :  { %v1321_v54 = vld [vmem:[#allocation8 + $0x1d0] ss:$8 sps:$4 sm:$0xff]   ;;  %v1326_v55 = vld [vmem:[#allocation8 + $0xc4] ss:$8 sps:$4 sm:$0xff]   ;;  %v1324_v57 = vld [vmem:[#allocation8 + $0xc0] ss:$8 sps:$4 sm:$0xff]  }
  0x61   :  { %679 = vmatpush1.bf16.msra.mxu0 %v1270_v21  ;;  %720 = vmatpush1.bf16.msra.mxu1 %v1273_v22  ;;  %v1329_v56 = vld [vmem:[#allocation8 + $0x1c4] ss:$8 sps:$4 sm:$0xff]   ;;  %v1327_v58 = vld [vmem:[#allocation8 + $0x1c0] ss:$8 sps:$4 sm:$0xff]   ;;  %v1332_v59 = vld [vmem:[#allocation8 + $0xb4] ss:$8 sps:$4 sm:$0xff]  }
  0x62   :  { %680 = vmatprep.subr.bf16.mxu0 %v1278_v23  ;;  %721 = vmatprep.subr.bf16.mxu1 %v1281_v24  ;;  %v1335_v60 = vld [vmem:[#allocation8 + $0x1b4] ss:$8 sps:$4 sm:$0xff]   ;;  %v1330_v61 = vld [vmem:[#allocation8 + $0xb0] ss:$8 sps:$4 sm:$0xff]   ;;  %v1338_v63 = vld [vmem:[#allocation8 + $0xa4] ss:$8 sps:$4 sm:$0xff]  }
  0x63   :  { %v1333_v62 = vld [vmem:[#allocation8 + $0x1b0] ss:$8 sps:$4 sm:$0xff]   ;;  %v1341_v0 = vld [vmem:[#allocation8 + $0x1a4] ss:$8 sps:$4 sm:$0xff]   ;;  %v1336_v1 = vld [vmem:[#allocation8 + $0xa0] ss:$8 sps:$4 sm:$0xff]  }
  0x64   :  { %v1339_v2 = vld [vmem:[#allocation8 + $0x1a0] ss:$8 sps:$4 sm:$0xff]   ;;  %v1344_v3 = vld [vmem:[#allocation8 + $0x94] ss:$8 sps:$4 sm:$0xff]   ;;  %v1342_v5 = vld [vmem:[#allocation8 + $0x90] ss:$8 sps:$4 sm:$0xff]  }
  0x65   :  { %681 = vmatpush1.bf16.msra.mxu0 %v1276_v25  ;;  %722 = vmatpush1.bf16.msra.mxu1 %v1279_v26  ;;  %v1347_v4 = vld [vmem:[#allocation8 + $0x194] ss:$8 sps:$4 sm:$0xff]   ;;  %v1345_v6 = vld [vmem:[#allocation8 + $0x190] ss:$8 sps:$4 sm:$0xff]   ;;  %v1350_v7 = vld [vmem:[#allocation8 + $0x84] ss:$8 sps:$4 sm:$0xff]  }
  0x66   :  { %682 = vmatprep.subr.bf16.mxu0 %v1284_v27  ;;  %723 = vmatprep.subr.bf16.mxu1 %v1287_v28  ;;  %v1353_v8 = vld [vmem:[#allocation8 + $0x184] ss:$8 sps:$4 sm:$0xff]   ;;  %v1348_v9 = vld [vmem:[#allocation8 + $0x80] ss:$8 sps:$4 sm:$0xff]   ;;  %v1354_v11 = vld [vmem:[#allocation10 + $0x78] sm:$0xff]   ;;  %v1616_v13 = vshrl.u32 %v124_v12, 7 }
  0x67   :  { %v1351_v10 = vld [vmem:[#allocation8 + $0x180] ss:$8 sps:$4 sm:$0xff]   ;;  %v122_v16 = vld [vmem:[#allocation7] sm:$0xf] }
  0x68   :  { %v126_v14 = vsub.s32 0, %v1616_v13  ;;  %v134_v15 = vsub.s32 2, %v1616_v13  ;;  %v130_v17 = vsub.s32 1, %v1616_v13  ;;  %v138_v18 = vsub.s32 3, %v1616_v13  ;;  %v1375_v13 = vld [vmem:[#allocation11 + $0x10] sm:$0xff]  }
  0x69   :  { %683 = vmatpush1.bf16.msra.mxu0 %v1282_v29  ;;  %724 = vmatpush1.bf16.msra.mxu1 %v1285_v30 }
  0x6a   :  { %684 = vmatprep.subr.bf16.mxu0 %v1290_v31  ;;  %725 = vmatprep.subr.bf16.mxu1 %v1293_v32  ;;  %v127_v19 = vrot.slane %v122_v16, %v126_v14  ;;  %v135_v20 = vrot.slane %v122_v16, %v134_v15  ;;  %v131_v21 = vrot.slane %v122_v16, %v130_v17 }
  0x6b   :  { %v139_v22 = vrot.slane %v122_v16, %v138_v18 }
  0x6d   :  { %685 = vmatpush1.bf16.msra.mxu0 %v1288_v33  ;;  %726 = vmatpush1.bf16.msra.mxu1 %v1291_v34 }
  0x6e   :  { %686 = vmatprep.subr.bf16.mxu0 %v1296_v35  ;;  %727 = vmatprep.subr.bf16.mxu1 %v1299_v36 }
  0x71   :  { %687 = vmatpush1.bf16.msra.mxu0 %v1294_v37  ;;  %728 = vmatpush1.bf16.msra.mxu1 %v1297_v38 }
  0x72   :  { %688 = vmatprep.subr.bf16.mxu0 %v1302_v39  ;;  %729 = vmatprep.subr.bf16.mxu1 %v1305_v40 }
  0x75   :  { %689 = vmatpush1.bf16.msra.mxu0 %v1300_v41  ;;  %730 = vmatpush1.bf16.msra.mxu1 %v1303_v42  ;;  %v1355_v42 = vld [vmem:[#allocation10 + $0x38] sm:$0xff]  }
  0x76   :  { %690 = vmatprep.subr.bf16.mxu0 %v1308_v43  ;;  %731 = vmatprep.subr.bf16.mxu1 %v1311_v44  ;;  %v1356_v44 = vld [vmem:[#allocation10 + $0x70] sm:$0xff]  }
  0x79   :  { %691 = vmatpush2.bf16.msra.mxu0 %v1306_v45  ;;  %732 = vmatpush2.bf16.msra.mxu1 %v1309_v46  ;;  %v1357_v45 = vld [vmem:[#allocation10 + $0x30] sm:$0xff]   ;;  %v1358_v46 = vld [vmem:[#allocation10 + $0x68] sm:$0xff]  }
  0x7a   :  { %692 = vmatprep.subr.bf16.mxu0 %v1314_v47  ;;  %733 = vmatprep.subr.bf16.mxu1 %v1317_v48  ;;  %v1359_v47 = vld [vmem:[#allocation10 + $0x28] sm:$0xff]   ;;  %v1360_v48 = vld [vmem:[#allocation10 + $0x60] sm:$0xff]  }
  0x7d   :  { %693 = vmatpush2.bf16.msra.mxu0 %v1312_v49  ;;  %734 = vmatpush2.bf16.msra.mxu1 %v1315_v50  ;;  %v1361_v49 = vld [vmem:[#allocation10 + $0x20] sm:$0xff]   ;;  %v1362_v50 = vld [vmem:[#allocation10 + $0x58] sm:$0xff]  }
  0x7e   :  { %694 = vmatprep.subr.bf16.mxu0 %v1320_v51  ;;  %735 = vmatprep.subr.bf16.mxu1 %v1323_v52  ;;  %v1363_v51 = vld [vmem:[#allocation10 + $0x18] sm:$0xff]   ;;  %v1364_v52 = vld [vmem:[#allocation10 + $0x50] sm:$0xff]  }
  0x81   :  { %695 = vmatpush2.bf16.msra.mxu0 %v1318_v53  ;;  %736 = vmatpush2.bf16.msra.mxu1 %v1321_v54  ;;  %v1365_v53 = vld [vmem:[#allocation10 + $0x10] sm:$0xff]   ;;  %v1366_v54 = vld [vmem:[#allocation10 + $0x48] sm:$0xff]  }
  0x82   :  { %696 = vmatprep.subr.bf16.mxu0 %v1326_v55  ;;  %737 = vmatprep.subr.bf16.mxu1 %v1329_v56  ;;  %v1367_v55 = vld [vmem:[#allocation10 + $0x8] sm:$0xff]   ;;  %v1368_v56 = vld [vmem:[#allocation10 + $0x40] sm:$0xff]  }
  0x85   :  { %697 = vmatpush2.bf16.msra.mxu0 %v1324_v57  ;;  %738 = vmatpush2.bf16.msra.mxu1 %v1327_v58  ;;  %v1369_v57 = vld [vmem:[#allocation10] sm:$0xff]   ;;  %v1370_v58 = vld [vmem:[#allocation11 + $0x38] sm:$0xff]  }
  0x86   :  { %698 = vmatprep.subr.bf16.mxu0 %v1332_v59  ;;  %739 = vmatprep.subr.bf16.mxu1 %v1335_v60  ;;  %v1545_v59 = vmov 0.0   ;;  %v1371_v60 = vld [vmem:[#allocation11 + $0x30] sm:$0xff]  }
  0x89   :  { %699 = vmatpush2.bf16.msra.mxu0 %v1330_v61  ;;  %740 = vmatpush2.bf16.msra.mxu1 %v1333_v62  ;;  %v1372_v61 = vld [vmem:[#allocation11 + $0x28] sm:$0xff]   ;;  %v1373_v62 = vld [vmem:[#allocation11 + $0x20] sm:$0xff]  }
  0x8a   :  { %700 = vmatprep.subr.bf16.mxu0 %v1338_v63  ;;  %741 = vmatprep.subr.bf16.mxu1 %v1341_v0  ;;  %v1374_v63 = vld [vmem:[#allocation11 + $0x18] sm:$0xff]   ;;  %v342_v0 = vld [vmem:[%s1646_s4] sm:$0x3] }
  0x8d   :  { %701 = vmatpush2.bf16.msra.mxu0 %v1336_v1  ;;  %742 = vmatpush2.bf16.msra.mxu1 %v1339_v2  ;;  %v347_v1 = vrot.slane %v342_v0, %v126_v14  ;;  %v351_v2 = vrot.slane %v342_v0, %v130_v17  ;;  %v1376_v14 = vld [vmem:[#allocation11 + $0x8] sm:$0xff]   ;;  %v1377_v17 = vld [vmem:[#allocation11] sm:$0xff]  }
  0x8e   :  { %702 = vmatprep.subr.bf16.mxu0 %v1344_v3  ;;  %743 = vmatprep.subr.bf16.mxu1 %v1347_v4 }
  0x91   :  { %703 = vmatpush2.bf16.msra.mxu0 %v1342_v5  ;;  %744 = vmatpush2.bf16.msra.mxu1 %v1345_v6 }
  0x92   :  { %704 = vmatprep.subr.bf16.mxu0 %v1350_v7  ;;  %745 = vmatprep.subr.bf16.mxu1 %v1353_v8 }
  0x95   :  { %705 = vmatpush2.bf16.msra.mxu0 %v1348_v9  ;;  %746 = vmatpush2.bf16.msra.mxu1 %v1351_v10 }
  0x96   :  { %1179 = vmatprep.subr.bf16.mxu0 %v1354_v11  ;;  %1210 = vmatprep.subr.bf16.mxu1 %v1545_v59 }
 0x118   :  { %v222_v23 = vpop.f32.mrf.mxu0  ;;  %v263_v24 = vpop.f32.mrf.mxu1 }
 0x119   :  { %v223_v25 = vadd.f32 %v222_v23, %v127_v19  ;;  %v264_v26 = vadd.f32 %v263_v24, %v135_v20  ;;  %v1153_v23 = vld [vmem:[%s1648_s6] ss:$0 sm:$0xff]  ;;  %s1547_s6 = smov [#allocation13]  }
 0x11a   :  { %v224_v27 = vpop.f32.mrf.mxu0  ;;  %v265_v28 = vpop.f32.mrf.mxu1  ;;  %s1067_s23 = sshll.u32 %s1547_s6, 4  ;;  %s1068_s23 = int_to_ptr.vmem [resolvable:$true] %s1067_s23 }
 0x11b   :  { %v272_v29 = vmax.f32 %v264_v26, 0.0  ;;  %v225_v30 = vadd.f32 %v224_v27, %v131_v21  ;;  %v266_v31 = vadd.f32 %v265_v28, %v139_v22  ;;  %v270_v32 = vmax.f32 %v223_v25, 0.0  ;;  %p1507_p3 = scmp.lt.s32.totalorder %s1068_s23, %s1068_s23 }
 0x11c   :  { %v226_v33 = vpop.f32.mrf.mxu0  ;;  %v267_v34 = vpop.f32.mrf.mxu1 }
 0x11d   :  { %v271_v35 = vmax.f32 %v225_v30, 0.0  ;;  %v273_v36 = vmax.f32 %v266_v31, 0.0  ;;  %v276_v37 = vpack.c.bf16 %v272_v29, %v272_v29  ;;  %v274_v43 = vpack.c.bf16 %v270_v32, %v270_v32  ;;  %v1170_v31 = vld [vmem:[%s1650_s8] ss:$0 sm:$0xff]  ;;  %s1502_s8 = scalar_lea.vmem %s1068_s23, 128 }
 0x11e   :  { %v227_v38 = vpop.f32.mrf.mxu0  ;;  %v268_v39 = vpop.f32.mrf.mxu1  ;;  %p1503_p2 = scmp.ne.s32.totalorder %s1068_s23, %s1502_s8  ;;  %p1508_p4 = scmp.lt.s32.totalorder %s1502_s8, %s1502_s8 }
 0x11f   :  { %v275_v40 = vpack.c.bf16 %v271_v35, %v271_v35  ;;  %v277_v41 = vpack.c.bf16 %v273_v36, %v273_v36 }
 0x120   :  { %p1509_p5 = por %p1508_p4, %p1507_p3 }
 0x121   :  { %706 = vmatprep.mubr.bf16.mxu0 %v275_v40  ;;  %747 = vmatprep.mubr.bf16.mxu1 %v277_v41 }
 0x122   :  { %707 = vmatmul.mubr.bf16.vlgmr.msra.gmra.mxu0 %v274_v43  ;;  %748 = vmatmul.mubr.bf16.vlgmr.msra.gmra.mxu1 %v276_v37  ;;  %p1510_p6 = pnand %p1509_p5, %p1503_p2 }
 0x123   :  { %1180 = vmatpush3.bf16.msra.mxu0 %v1355_v42  ;;  %1211 = vmatpush3.bf16.msra.mxu1 %v1370_v58 }
 0x124   :  { %1181 = vmatprep.subr.bf16.mxu0 %v1356_v44  ;;  %1212 = vmatprep.subr.bf16.mxu1 %v1545_v59 }
 0x125   :  { %1226 = vmatprep.mubr.msk.bf16.mxu1 %vm1546_vm1, %v1545_v59 }
 0x127   :  { %1182 = vmatpush3.bf16.msra.mxu0 %v1357_v45  ;;  %1213 = vmatpush3.bf16.msra.mxu1 %v1371_v60 }
 0x128   :  { %1183 = vmatprep.subr.bf16.mxu0 %v1358_v46  ;;  %1214 = vmatprep.subr.bf16.mxu1 %v1545_v59 }
 0x12b   :  { %1184 = vmatpush3.bf16.msra.mxu0 %v1359_v47  ;;  %1215 = vmatpush3.bf16.msra.mxu1 %v1372_v61 }
 0x12c   :  { %1185 = vmatprep.subr.bf16.mxu0 %v1360_v48  ;;  %1216 = vmatprep.subr.bf16.mxu1 %v1545_v59 }
 0x12f   :  { %1186 = vmatpush3.bf16.msra.mxu0 %v1361_v49  ;;  %1217 = vmatpush3.bf16.msra.mxu1 %v1373_v62 }
 0x130   :  { %1187 = vmatprep.subr.bf16.mxu0 %v1362_v50  ;;  %1218 = vmatprep.subr.bf16.mxu1 %v1545_v59 }
 0x133   :  { %1188 = vmatpush3.bf16.msra.mxu0 %v1363_v51  ;;  %1219 = vmatpush3.bf16.msra.mxu1 %v1374_v63 }
 0x134   :  { %1189 = vmatprep.subr.bf16.mxu0 %v1364_v52  ;;  %1220 = vmatprep.subr.bf16.mxu1 %v1545_v59 }
 0x137   :  { %1190 = vmatpush3.bf16.msra.mxu0 %v1365_v53  ;;  %1221 = vmatpush3.bf16.msra.mxu1 %v1375_v13 }
 0x138   :  { %1191 = vmatprep.subr.bf16.mxu0 %v1366_v54  ;;  %1222 = vmatprep.subr.bf16.mxu1 %v1545_v59 }
 0x13b   :  { %1192 = vmatpush3.bf16.msra.mxu0 %v1367_v55  ;;  %1223 = vmatpush3.bf16.msra.mxu1 %v1376_v14 }
 0x13c   :  { %1193 = vmatprep.subr.bf16.mxu0 %v1368_v56  ;;  %1224 = vmatprep.subr.bf16.mxu1 %v1545_v59 }
 0x13f   :  { %1194 = vmatpush3.bf16.msra.mxu0 %v1369_v57  ;;  %1225 = vmatpush3.bf16.msra.mxu1 %v1377_v17 }
 0x1e2   :  { %v708_v3 = vpop.f32.mrf.mxu0  ;;  %v749_v4 = vpop.f32.mrf.mxu1 }
 0x1e3   :  { %v709_v5 = vadd.f32 %v708_v3, %v347_v1 }
 0x1e4   :  { %v710_v6 = vpop.f32.mrf.mxu0  ;;  %v751_v7 = vpop.f32.mrf.mxu1 }
 0x1e5   :  { %v750_v8 = vadd.f32 %v749_v4, %v709_v5  ;;  %v711_v9 = vadd.f32 %v710_v6, %v351_v2 }
 0x1e6   :  { %v712_v10 = vpop.f32.mrf.mxu0  ;;  %v753_v11 = vpop.f32.mrf.mxu1 }
 0x1e7   :  { %v752_v12 = vadd.f32 %v751_v7, %v711_v9  ;;  %v756_v15 = vmax.f32 %v750_v8, 0.0 }
 0x1e8   :  { %v713_v16 = vpop.f32.mrf.mxu0  ;;  %v754_v18 = vpop.f32.mrf.mxu1 }
 0x1e9   :  { %v757_v19 = vmax.f32 %v752_v12, 0.0  ;;  %v758_v21 = vpack.c.bf16 %v756_v15, %v756_v15 }
 0x1eb   :  { %v759_v20 = vpack.c.bf16 %v757_v19, %v757_v19 }
 0x1ed   :  { %927 = vmatprep.mubr.bf16.mxu0 %v759_v20 }
 0x1ee   :  { %928 = vmatmul.mubr.bf16.vlgmr.msra.gmra.mxu0 %v758_v21 }
 0x2ae   :  { %v1195_v22 = vpop.f32.mrf.mxu0 }
 0x2b0   :  { %v1196_v24 = vpop.f32.mrf.mxu0 }
 0x2b1   :  { %v1197_v25 = vadd.f32 %v1196_v24, %v1195_v22 }
 0x2b2   :  { %v1198_v26 = vpop.f32.mrf.mxu0 }
 0x2b3   :  { %v930_v27 = vadd.f32 %v1197_v25, %v1153_v23 }
 0x2b4   :  { %v1199_v28 = vpop.f32.mrf.mxu0 }
 0x2b5   :  { %v935_v29 = vmax.f32 %v930_v27, 0.0 }
 0x2b7   :  { %v936_v30 = vpack.c.bf16 %v935_v29, %v935_v29 }
 0x2b9   :  { %1227 = vmatmul.mubr.bf16.vlgmr.msra.gmra.mxu1 %v936_v30 }
 0x379   :  { %v1042_v32 = vpop.f32.mrf.mxu1 }
 0x37a   :  { %v1043_v33 = vadd.f32 %v1170_v31, %v1042_v32 }
 0x37b   :  { %v1228_v34 = vpop.f32.mrf.mxu1 }
 0x37c   :  { %1048 = vmax.xlane.f32.xlu0 %v1043_v33 }
 0x37d   :  { %v1045_v35 = vpop.f32.mrf.mxu1 }
 0x37f   :  { %v1229_v36 = vpop.f32.mrf.mxu1 }
 0x405   :  { %v1049_v37 = vpop.xlane.xlu0 %1048 }
 0x406   :  { %v1050_v38 = vsub.f32 %v1043_v33, %v1049_v37 }
 0x408   :  { %v1051_v39 = vmul.f32 1.442695, %v1050_v38 }
 0x40a   :  { %1378 = vpow2.f32 %v1051_v39 }
 0x417   :  { %v1379_v40 = vpop.eup %1378 }
 0x418   :  { %1053 = vadd.xlane.f32.xlu0 %v1379_v40 }
 0x4a1   :  { %v1054_v41 = vpop.xlane.xlu0 %1053 }
 0x4a2   :  { %1380 = vrcp.f32 %v1054_v41 }
 0x4af   :  { %v1381_v42 = vpop.eup %1380 }
 0x4b0   :  { %v1056_v43 = vmul.f32 %v1381_v42, %v1054_v41 }
 0x4b2   :  { %v1057_v44 = vsub.f32 2.0, %v1056_v43 }
 0x4b4   :  { %v1058_v45 = vmul.f32 %v1381_v42, %v1057_v44 }
 0x4b6   :  { %v1059_v46 = vmul.f32 %v1379_v40, %v1058_v45 }
 0x4b8   :  { %1060 = vst [vmem:[#allocation13] sm:$0xff] %v1059_v46 }
 0x4b9   :  { %1513 = shalt.err (!%p1510_p6)
}
 0x4ba   :  { %1070 = dma.vmem_to_hbm [thread:$0]  %s1068_s23, 128, %s1651_s9, [#allocation4]  }
 0x4bb   :  { %1530 = dma.done.wait [#allocation4], 128  }
 0x4bc   :  { %1531 = vsyncadd [#allocation4], 4294967168 }
 0x4bd   :  { %1074 = vsyncpa [#allocation3], 1 }
 0x4be   :  { %1075 = vsyncpa [#allocation6], 1 }
 0x4bf   :  { %1076 = vsyncpa [#allocation9], 1 }
 0x4c0   :  { %1077 = vsyncpa [#allocation12], 1 }
 0x4c1   :  { %1078 = vsyncpa [#allocation4], 1 }

</bundles_post_ra>
